<compile_context>
chip_gen: v6e
topology: v6e:2x2x1
jax: 0.10.0
libtpu: 0.0.40
codegen_flags: <defaults>
</compile_context>

<pallas_src>
import math

import jax
import jax.numpy as jnp
from jax import lax
from jax.experimental import pallas as pl
from jax.experimental.pallas import tpu as pltpu


def _round_up(a, m):
    return (a + m - 1) // m * m


def _cdiv(a, b):
    return (a + b - 1) // b


def _vmem_capacity_bytes():
    """Best-effort VMEM capacity query; conservative (v7x) fallback."""
    try:
        info = pltpu.get_tpu_info()
        for name in ("vmem_capacity_bytes", "vmem_bytes", "vmem_size_bytes"):
            v = getattr(info, name, None)
            if v:
                return int(v)
    except Exception:
        pass
    return 64 * 1024 * 1024


def _make_kernel(*, has_bias, use_scratch, ragged_i, total_i, i_tile, b_tile):
    def kernel(*refs):
        x_ref, w_ref = refs[0], refs[1]
        idx = 2
        if has_bias:
            b_ref = refs[idx]
            idx += 1
        o_ref = refs[idx]
        idx += 1
        acc_ref = refs[idx] if use_scratch else o_ref

        k = pl.program_id(2)

        @pl.when(k == 0)
        def _():
            acc_ref[...] = jnp.zeros_like(acc_ref)

        if ragged_i:
            # Mask for the ragged tail of the reduction axis (garbage there would
            # corrupt valid outputs).  All-true for non-final I tiles.
            col = lax.broadcasted_iota(jnp.int32, (1, i_tile), 1)
            valid = col < (total_i - k * i_tile)

        def body(b, carry):
            # (O_T, I_T) product in the input dtype; f32 accumulate of the lane reduce.
            p = x_ref[b] * w_ref[...]
            if ragged_i:
                p = jnp.where(valid, p, jnp.zeros((), p.dtype))
            s = jnp.sum(p, axis=-1, dtype=jnp.float32)          # (O_T,)
            row = acc_ref[pl.ds(b, 1), :]
            acc_ref[pl.ds(b, 1), :] = row + s[None, :].astype(acc_ref.dtype)
            return carry

        lax.fori_loop(0, b_tile, body, 0)

        if use_scratch or has_bias:
            @pl.when(k == pl.num_programs(2) - 1)
            def _():
                r = acc_ref[...].astype(jnp.float32)
                if has_bias:
                    r = r + b_ref[...].astype(jnp.float32)
                o_ref[...] = r.astype(o_ref.dtype)

    return kernel


def text_head_forward(x, weight, bias=None, *, b_tile=None, o_tile=None, i_tile=None):
    """x: (B, O, I); weight: (O, I); bias: (O,) or None. Returns (B, O)."""
    B, O, I = x.shape
    assert weight.shape == (O, I)
    has_bias = bias is not None
    out_dtype = jnp.result_type(x.dtype, weight.dtype)
    itemsize = jnp.dtype(x.dtype).itemsize

    # Generation-aware budgets.
    vmem_cap = _vmem_capacity_bytes()
    big_vmem = vmem_cap >= 96 * 1024 * 1024          # v5e / v6e (128 MiB)
    x_block_budget = (24 if big_vmem else 10) * 1024 * 1024
    vmem_limit = (96 if big_vmem else 44) * 1024 * 1024

    # Tile sizes: lane-dense output (O_T multiple of 128), sublane-aligned batch
    # (B_T multiple of 8).  No host-side padding; final blocks may be ragged.
    B_T = _round_up(b_tile, 8) if b_tile is not None else min(_round_up(B, 8), 32)
    O_T = _round_up(o_tile, 128) if o_tile is not None else min(_round_up(O, 128), 256)

    # Keep both TensorCores busy on v7x: ensure the parallel sub-grid has >= 2 tiles
    # whenever the problem allows it.
    if o_tile is None and _cdiv(O, O_T) * _cdiv(B, B_T) == 1 and O > 128:
        O_T = 128

    I_pad = _round_up(I, 128)
    if i_tile is not None:
        I_T = min(_round_up(i_tile, 128), I_pad)
    else:
        fit = max(x_block_budget // (B_T * O_T * itemsize), 128)
        I_T = min(I_pad, max(128, (fit // 128) * 128))

    ragged_i = (I % I_T) != 0
    use_scratch = out_dtype != jnp.float32

    grid = (_cdiv(O, O_T), _cdiv(B, B_T), _cdiv(I, I_T))

    in_specs = [
        # x: (B_T, O_T, I_T) streamed over all three grid axes.
        pl.BlockSpec((B_T, O_T, I_T), lambda o, b, k: (b, o, k)),
        # weight: independent of b; with a single k step it stays resident across b.
        pl.BlockSpec((O_T, I_T), lambda o, b, k: (o, k)),
    ]
    args = [x, weight]
    if has_bias:
        in_specs.append(pl.BlockSpec((1, O_T), lambda o, b, k: (0, o)))
        args.append(bias.reshape(1, O))

    scratch_shapes = [pltpu.VMEM((B_T, O_T), jnp.float32)] if use_scratch else []

    kernel = _make_kernel(
        has_bias=has_bias, use_scratch=use_scratch, ragged_i=ragged_i,
        total_i=I, i_tile=I_T, b_tile=B_T)

    out = pl.pallas_call(
        kernel,
        out_shape=jax.ShapeDtypeStruct((B, O), out_dtype),
        grid_spec=pltpu.PrefetchScalarGridSpec(
            num_scalar_prefetch=0,
            grid=grid,
            in_specs=in_specs,
            out_specs=pl.BlockSpec((B_T, O_T), lambda o, b, k: (b, o)),
            scratch_shapes=scratch_shapes,
        ),
        compiler_params=pltpu.CompilerParams(
            dimension_semantics=("parallel", "parallel", "arbitrary"),
            vmem_limit_bytes=vmem_limit,
        ),
    )(*args)
    return out


def init_text_head_params(key, in_features, out_features, bias=True):
    """Deterministic re-implementation of TextHead.reset_parameters()."""
    kw, kb = jax.random.split(key)
    # kaiming_uniform_(a=sqrt(5)) -> bound = sqrt(6/((1+a^2)*fan_in)) = 1/sqrt(fan_in)
    fan_in = in_features
    w_bound = 1.0 / math.sqrt(fan_in)
    weight = jax.random.uniform(
        kw, (out_features, in_features), jnp.float32, -w_bound, w_bound)
    if bias:
        b_bound = 1.0 / math.sqrt(fan_in) if fan_in > 0 else 0.0
        b = jax.random.uniform(kb, (out_features,), jnp.float32, -b_bound, b_bound)
    else:
        b = None
    return weight, b


if __name__ == "__main__":
    key = jax.random.PRNGKey(0)
    kx, kp, kx2, kp2, kx3, kp3, kx4, kp4 = jax.random.split(key, 8)

    # --- 1) Small shapes implied by the forward (single ragged tile, bias, f32).
    B, OUT_F, IN_F = 2, 8, 32
    x = jax.random.normal(kx, (B, OUT_F, IN_F), dtype=jnp.float32)
    weight, bias = init_text_head_params(kp, IN_F, OUT_F, bias=True)
    out = jax.block_until_ready(text_head_forward(x, weight, bias))
    ref = jnp.sum(x * weight[None, :, :], axis=2) + bias[None, :]
    assert out.shape == (B, OUT_F)
    assert jnp.allclose(out, ref, atol=1e-5, rtol=1e-5)

    # --- 2) Unaligned shapes: multi-tile O grid, ragged B/O/I tails, bias=None.
    B2, OUT_F2, IN_F2 = 10, 300, 1300
    x2 = jax.random.normal(kx2, (B2, OUT_F2, IN_F2), dtype=jnp.float32)
    weight2, _ = init_text_head_params(kp2, IN_F2, OUT_F2, bias=False)
    out2 = jax.block_until_ready(text_head_forward(x2, weight2, None))
    ref2 = jnp.sum(x2 * weight2[None, :, :], axis=2)
    assert out2.shape == (B2, OUT_F2)
    assert jnp.allclose(out2, ref2, atol=1e-4, rtol=1e-4)

    # --- 3) Forced multi-step I reduction (exercise the k-accumulation + ragged I mask).
    B3, OUT_F3, IN_F3 = 5, 70, 700
    x3 = jax.random.normal(kx3, (B3, OUT_F3, IN_F3), dtype=jnp.float32)
    weight3, bias3 = init_text_head_params(kp3, IN_F3, OUT_F3, bias=True)
    out3 = jax.block_until_ready(
        text_head_forward(x3, weight3, bias3, b_tile=8, i_tile=256))
    ref3 = jnp.sum(x3 * weight3[None, :, :], axis=2) + bias3[None, :]
    assert out3.shape == (B3, OUT_F3)
    assert jnp.allclose(out3, ref3, atol=1e-4, rtol=1e-4)

    # --- 4) bf16 inputs (exercise the f32 scratch-accumulator path).
    B4, OUT_F4, IN_F4 = 4, 64, 96
    x4 = jax.random.normal(kx4, (B4, OUT_F4, IN_F4), dtype=jnp.float32)
    weight4, bias4 = init_text_head_params(kp4, IN_F4, OUT_F4, bias=True)
    x4b, w4b, b4b = x4.astype(jnp.bfloat16), weight4.astype(jnp.bfloat16), bias4.astype(jnp.bfloat16)
    out4 = jax.block_until_ready(text_head_forward(x4b, w4b, b4b))
    ref4 = (jnp.sum(x4b.astype(jnp.float32) * w4b.astype(jnp.float32)[None, :, :], axis=2)
            + b4b.astype(jnp.float32)[None, :])
    assert out4.shape == (B4, OUT_F4) and out4.dtype == jnp.bfloat16
    assert jnp.allclose(out4.astype(jnp.float32), ref4, atol=5e-2, rtol=5e-2)

    print("KERNEL_OK")
</pallas_src>

<mosaic_0001>
module attributes {stable_mosaic.version = 11 : i64} {
  func.func @kernel(%arg0: i32, %arg1: i32, %arg2: i32, %arg3: memref<8x128x128xf32, #tpu.memory_space<vmem>>, %arg4: memref<128x128xf32, #tpu.memory_space<vmem>>, %arg5: memref<1x128xf32, #tpu.memory_space<vmem>>, %arg6: memref<8x128xf32, #tpu.memory_space<vmem>>) attributes {dimension_semantics = [#tpu.dimension_semantics<parallel>, #tpu.dimension_semantics<parallel>, #tpu.dimension_semantics<arbitrary>], iteration_bounds = array<i64: 1, 1, 1>, scalar_prefetch = 0 : i64, scratch_operands = 0 : i64, tpu.core_type = #tpu.core_type<tc>, window_params = [{transform_indices = @transform_0, window_bounds = array<i64: 8, 128, 128>}, {transform_indices = @transform_1, window_bounds = array<i64: 128, 128>}, {transform_indices = @transform_2, window_bounds = array<i64: 1, 128>}, {transform_indices = @transform_3, window_bounds = array<i64: 8, 128>}]} {
    %c0_i32 = arith.constant 0 : i32
    %0 = arith.cmpi eq, %arg2, %c0_i32 : i32
    %1 = arith.extui %0 : i1 to i32
    %c0_i32_0 = arith.constant 0 : i32
    %2 = arith.cmpi ne, %1, %c0_i32_0 : i32
    scf.if %2 {
      %cst = arith.constant 0.000000e+00 : f32
      %12 = vector.broadcast %cst : f32 to vector<8x128xf32>
      %c0 = arith.constant 0 : index
      %c0_5 = arith.constant 0 : index
      %13 = vector.load %arg6[%c0, %c0_5] : memref<8x128xf32, #tpu.memory_space<vmem>>, vector<8x128xf32>
      tpu.vector_store %arg6[%c0, %c0_5], %12 {strides = array<i32>} : memref<8x128xf32, #tpu.memory_space<vmem>>, vector<8x128xf32>,
    } else {
    }
    %3 = tpu.iota {dimensions = array<i32: 1>} : vector<1x128xi32>
    %c128_i32 = arith.constant 128 : i32
    %4 = arith.muli %arg2, %c128_i32 : i32
    %c32_i32 = arith.constant 32 : i32
    %5 = arith.subi %c32_i32, %4 : i32
    %6 = vector.broadcast %5 : i32 to vector<1x128xi32>
    %7 = arith.cmpi slt, %3, %6 : vector<1x128xi32>
    %c0_i32_1 = arith.constant 0 : i32
    %c8_i32 = arith.constant 8 : i32
    %8 = arith.addi %c0_i32_1, %c8_i32 : i32
    %c1_i32 = arith.constant 1 : i32
    scf.for %arg7 = %c0_i32_1 to %8 step %c1_i32  : i32 {
      %12 = arith.index_cast %arg7 : i32 to index
      %c0 = arith.constant 0 : index
      %c0_5 = arith.constant 0 : index
      %13 = vector.load %arg3[%12, %c0, %c0_5] : memref<8x128x128xf32, #tpu.memory_space<vmem>>, vector<1x128x128xf32>
      %14 = vector.shape_cast %13 : vector<1x128x128xf32> to vector<128x128xf32>
      %c0_6 = arith.constant 0 : index
      %c0_7 = arith.constant 0 : index
      %15 = vector.load %arg4[%c0_6, %c0_7] : memref<128x128xf32, #tpu.memory_space<vmem>>, vector<128x128xf32>
      %16 = arith.mulf %14, %15 : vector<128x128xf32>
      %cst = arith.constant 0.000000e+00 : f32
      %17 = vector.shape_cast %7 : vector<1x128xi1> to vector<1x128xi1>
      %18 = vector.broadcast %17 : vector<1x128xi1> to vector<128x128xi1>
      %19 = vector.broadcast %cst : f32 to vector<128x128xf32>
      %20 = arith.select %18, %16, %19 : vector<128x128xi1>, vector<128x128xf32>
      %cst_8 = arith.constant dense<0.000000e+00> : vector<128xf32>
      %21 = vector.multi_reduction <add>, %20, %cst_8 [1] : vector<128x128xf32> to vector<128xf32>
      %22 = arith.index_cast %arg7 : i32 to index
      %c0_9 = arith.constant 0 : index
      %23 = vector.load %arg6[%22, %c0_9] : memref<8x128xf32, #tpu.memory_space<vmem>>, vector<1x128xf32>
      %24 = vector.shape_cast %21 : vector<128xf32> to vector<1x128xf32>
      %25 = arith.addf %23, %24 : vector<1x128xf32>
      %26 = arith.index_cast %arg7 : i32 to index
      %c0_10 = arith.constant 0 : index
      %27 = vector.load %arg6[%26, %c0_10] : memref<8x128xf32, #tpu.memory_space<vmem>>, vector<1x128xf32>
      tpu.vector_store %arg6[%26, %c0_10], %25 {strides = array<i32>} : memref<8x128xf32, #tpu.memory_space<vmem>>, vector<1x128xf32>,
    }
    %c8_i32_2 = arith.constant 8 : i32
    %c0_i32_3 = arith.constant 0 : i32
    %9 = arith.cmpi eq, %arg2, %c0_i32_3 : i32
    %10 = arith.extui %9 : i1 to i32
    %c0_i32_4 = arith.constant 0 : i32
    %11 = arith.cmpi ne, %10, %c0_i32_4 : i32
    scf.if %11 {
      %c0 = arith.constant 0 : index
      %c0_5 = arith.constant 0 : index
      %12 = vector.load %arg6[%c0, %c0_5] : memref<8x128xf32, #tpu.memory_space<vmem>>, vector<8x128xf32>
      %c0_6 = arith.constant 0 : index
      %c0_7 = arith.constant 0 : index
      %13 = vector.load %arg5[%c0_6, %c0_7] : memref<1x128xf32, #tpu.memory_space<vmem>>, vector<1x128xf32>
      %14 = vector.broadcast %13 : vector<1x128xf32> to vector<8x128xf32>
      %15 = arith.addf %12, %14 : vector<8x128xf32>
      %c0_8 = arith.constant 0 : index
      %c0_9 = arith.constant 0 : index
      %16 = vector.load %arg6[%c0_8, %c0_9] : memref<8x128xf32, #tpu.memory_space<vmem>>, vector<8x128xf32>
      tpu.vector_store %arg6[%c0_8, %c0_9], %15 {strides = array<i32>} : memref<8x128xf32, #tpu.memory_space<vmem>>, vector<8x128xf32>,
    } else {
    }
    return
  }
  func.func @transform_0(%arg0: i32, %arg1: i32, %arg2: i32) -> (i32, i32, i32) {
    %c0_i32 = arith.constant 0 : i32
    return %arg1, %arg0, %arg2 : i32, i32, i32
  }
  func.func @transform_1(%arg0: i32, %arg1: i32, %arg2: i32) -> (i32, i32) {
    %c0_i32 = arith.constant 0 : i32
    return %arg0, %arg2 : i32, i32
  }
  func.func @transform_2(%arg0: i32, %arg1: i32, %arg2: i32) -> (i32, i32) {
    %c0_i32 = arith.constant 0 : i32
    %c0_i32_0 = arith.constant 0 : i32
    return %c0_i32, %arg0 : i32, i32
  }
  func.func @transform_3(%arg0: i32, %arg1: i32, %arg2: i32) -> (i32, i32) {
    %c0_i32 = arith.constant 0 : i32
    return %arg1, %arg0 : i32, i32
  }
}

</mosaic_0001>

<bundles_post_ra>
// kernel: tpu_custom_call.1
= control target key start
LH: loop header
LB: loop body
LE: loop exit
PB: predicated region body
PF: predicated region fallthrough
CT: control target
= control target key end

     0   :  { %8 = vsyncpa [#allocation3], 0  ;;  %s579_s0 = inlined_call_operand.hbm [shape: f32[2,8,32], index: 0, kind: input, shape index: {}]   ;;  %s580_s1 = inlined_call_operand.hbm [shape: f32[8,32], index: 1, kind: input, shape index: {}]   ;;  %s581_s2 = inlined_call_operand.vmem [shape: f32[1,8], index: 2, kind: input, shape index: {}]   ;;  %s582_s3 = inlined_call_operand.hbm [shape: f32[2,8], index: 3, kind: output, shape index: {}]  }
   0x1   :  { %9 = vsyncpa [#allocation6], 0 }
   0x2   :  { %10 = vsyncpa [#allocation4], 0 }
   0x3   :  { %15 = vsyncadd [#allocation3], 16128  ;;  %s20_s12 = sld [smem:[#allocation0]]   ;;  %s434_s13 = smov [#allocation2]  }
   0x4   :  { %s28_s14 = sshll.u32 %s434_s13, 4  ;;  %s435_s15 = smov 128   ;;  %s29_s14 = int_to_ptr.vmem [resolvable:$true] %s28_s14 }
   0x5   :  { %35 = sst [smem:[#allocation9]] %s435_s15  ;;  %s436_s16 = smov 2048  }
   0x6   :  { %37 = sst [smem:[#allocation9 + $0x1]] %s436_s16  ;;  %s437_s17 = smov 1  }
   0x7   :  { %39 = sst [smem:[#allocation9 + $0x2]] %s437_s17  ;;  %s438_s20 = smov 8  }
   0x8   :  { %41 = sst [smem:[#allocation9 + $0x3]] %s435_s15  ;;  %s439_s21 = smov [#allocation3]  }
   0x9   :  { %s354_s18 = sshll.u32 %s20_s12, 26  ;;  %43 = sst [smem:[#allocation9 + $0x4]] %s435_s15 }
   0xa   :  { %s355_s19 = sadd.s32 134217728, %s354_s18  ;;  %45 = sst [smem:[#allocation9 + $0x5]] %s438_s20 }
   0xb   :  { %s440_s22 = smov 131072  }
   0xc   :  { %47 = dma.general %s579_s0, 256, %s29_s14, %s439_s21, %s440_s22, [#allocation9], %s355_s19, 0  }
   0xd   :  { %52 = vsyncadd [#allocation6], 1920  ;;  %s441_s25 = smov [#allocation5]  }
   0xe   :  { %s53_s26 = sshll.u32 %s441_s25, 4  ;;  %s54_s26 = int_to_ptr.vmem [resolvable:$true] %s53_s26 }
   0xf   :  { %s388_s27 = scalar_lea.vmem %s54_s26, 128  ;;  %s392_s28 = scalar_lea.vmem %s54_s26, 2048 }
  0x10   :  { %p389_p0 = scmp.ne.s32.totalorder %s54_s26, %s388_s27  ;;  %p393_p1 = scmp.lt.s32.totalorder %s54_s26, %s54_s26 }
  0x11   :  { %p394_p2 = scmp.lt.s32.totalorder %s392_s28, %s388_s27 }
  0x13   :  { %p395_p3 = por %p394_p2, %p393_p1 }
  0x15   :  { %p396_p4 = pnand %p395_p3, %p389_p0 }
  0x17   :  { %399 = shalt.err (!%p396_p4)
}
  0x18   :  { %s442_s29 = smov 128   ;;  %s443_s30 = smov 8  }
  0x19   :  { %59 = dma.hbm_to_vmem [thread:$0]  %s580_s1, 128, %s54_s26, [#allocation6], %s442_s29, %s442_s29, %s443_s30  }
  0x1a   :  { %424 = dma.done.wait [#allocation3], 16384  }
  0x1b   :  { %425 = vsyncadd [#allocation3], 4294950912 }
  0x1c   :  { %426 = dma.done.wait [#allocation6], 2048  }
  0x1d   :  { %427 = vsyncadd [#allocation6], 4294965248  ;;  %v73_v0 = vlaneseq  ;;  %v444_v1 = vmov 0.0   ;;  %s478_s0 = smov 0  }
  0x1e   :  { %72 = vst [vmem:[#allocation7] sm:$0xff] %v444_v1 }
  0x1f   :  { %v475_v2 = vand.u32 127, %v73_v0 }
  0x21   :  { %vm78_vm0 = vcmp.lt.s32.totalorder %v475_v2, 32 }
  0x22 LB: > { %s356_s1 = sshll.u32 %s432_s0, 7  ;;  %v103_v3 = vld [vmem:[#allocation5] sm:$0xff]  ;;  %v105_v4 = vld [vmem:[#allocation5 + $0x10] sm:$0xff]  ;;  %v104_v5 = vld [vmem:[#allocation5 + $0x8] sm:$0xff]  ;;  %vm212_vm1 = vcmask 130112   ;;  %vm219_vm2 = vcmask 195712   ;;  %s432_s0 = sphi %s478_s0, %s84_s0  }
  0x23   : > { %v106_v6 = vld [vmem:[#allocation5 + $0x18] sm:$0xff]  ;;  %s484_s6 = scalar_lea.vmem [#allocation2], %s356_s1  ;;  %v107_v14 = vld [vmem:[#allocation5 + $0x20] sm:$0xff]  ;;  %v108_v18 = vld [vmem:[#allocation5 + $0x28] sm:$0xff]  ;;  %vm226_vm3 = vcmask 261312   ;;  %vm233_vm4 = vcmask 326912  }
  0x24   : > { %v87_v7 = vld [vmem:[%s484_s6] sm:$0xff]  ;;  %v89_v8 = vld [vmem:[%s484_s6 + $0x10] sm:$0xff]  ;;  %v88_v9 = vld [vmem:[%s484_s6 + $0x8] sm:$0xff]  ;;  %vm240_vm5 = vcmask 392512   ;;  %vm247_vm6 = vcmask 458112   ;;  %vm254_vm7 = vcmask 523712  }
  0x25   : > { %v119_v10 = vmul.f32 %v103_v3, %v87_v7  ;;  %v121_v11 = vmul.f32 %v105_v4, %v89_v8  ;;  %v120_v12 = vmul.f32 %v104_v5, %v88_v9  ;;  %v90_v13 = vld [vmem:[%s484_s6 + $0x18] sm:$0xff]  ;;  %v91_v16 = vld [vmem:[%s484_s6 + $0x20] sm:$0xff]  ;;  %v92_v17 = vld [vmem:[%s484_s6 + $0x28] sm:$0xff]  ;;  %v535_v5 = vshrl.u32 %v73_v0, 7  ;;  %s185_s7 = scalar_lea.vmem [#allocation7], %s432_s0  ;;  %s84_s0 = sadd.s32 1, %s432_s0  }
  0x26   : > { %v122_v15 = vmul.f32 %v106_v6, %v90_v13  ;;  %v123_v23 = vmul.f32 %v107_v14, %v91_v16  ;;  %v124_v24 = vmul.f32 %v108_v18, %v92_v17  ;;  %v109_v25 = vld [vmem:[#allocation5 + $0x30] sm:$0xff]  ;;  %v94_v27 = vld [vmem:[%s484_s6 + $0x38] sm:$0xff]  ;;  %v111_v33 = vld [vmem:[#allocation5 + $0x40] sm:$0xff]  ;;  %v207_v6 = vadd.s32 4294967288, %v475_v2  ;;  %p81_p5 = scmp.ge.s32.totalorder %s84_s0, 8  }
  0x27   : > { %v137_v19 = vsel %vm78_vm0, %v119_v10, 0.0  ;;  %v139_v20 = vsel %vm78_vm0, %v121_v11, 0.0  ;;  %v138_v21 = vsel %vm78_vm0, %v120_v12, 0.0  ;;  %v93_v26 = vld [vmem:[%s484_s6 + $0x30] sm:$0xff]  ;;  %v110_v28 = vld [vmem:[#allocation5 + $0x38] sm:$0xff]  ;;  %v95_v34 = vld [vmem:[%s484_s6 + $0x40] sm:$0xff]  ;;  %v205_v12 = vsub.s32 %v475_v2, %v535_v5 }
  0x28   : > { %153 = vadd.xlane.f32.xlu0 %v137_v19  ;;  %157 = vadd.xlane.f32.xlu1 %v139_v20  ;;  %v140_v22 = vsel %vm78_vm0, %v122_v15, 0.0  ;;  %v141_v29 = vsel %vm78_vm0, %v123_v23, 0.0  ;;  %v142_v30 = vsel %vm78_vm0, %v124_v24, 0.0  ;;  %v125_v31 = vmul.f32 %v109_v25, %v93_v26  ;;  %v96_v35 = vld [vmem:[%s484_s6 + $0x48] sm:$0xff]  ;;  %v113_v41 = vld [vmem:[#allocation5 + $0x50] sm:$0xff]  ;;  %v98_v43 = vld [vmem:[%s484_s6 + $0x58] sm:$0xff] }
  0x29   : > { %v126_v32 = vmul.f32 %v110_v28, %v94_v27  ;;  %v112_v36 = vld [vmem:[#allocation5 + $0x48] sm:$0xff]  ;;  %v127_v39 = vmul.f32 %v111_v33, %v95_v34  ;;  %v97_v42 = vld [vmem:[%s484_s6 + $0x50] sm:$0xff]  ;;  %v114_v44 = vld [vmem:[#allocation5 + $0x58] sm:$0xff]  ;;  %v221_v7 = vadd.s32 4294967272, %v475_v2  ;;  %v214_v8 = vadd.s32 4294967280, %v475_v2 }
  0x2a   : > { %v143_v37 = vsel %vm78_vm0, %v125_v31, 0.0  ;;  %v128_v40 = vmul.f32 %v112_v36, %v96_v35  ;;  %v129_v47 = vmul.f32 %v113_v41, %v97_v42  ;;  %v130_v48 = vmul.f32 %v114_v44, %v98_v43  ;;  %v99_v49 = vld [vmem:[%s484_s6 + $0x60] sm:$0xff]  ;;  %v100_v51 = vld [vmem:[%s484_s6 + $0x68] sm:$0xff]  ;;  %v101_v57 = vld [vmem:[%s484_s6 + $0x70] sm:$0xff] }
  0x2b   : > { %v144_v38 = vsel %vm78_vm0, %v126_v32, 0.0  ;;  %v145_v45 = vsel %vm78_vm0, %v127_v39, 0.0  ;;  %v115_v50 = vld [vmem:[#allocation5 + $0x60] sm:$0xff]  ;;  %v116_v52 = vld [vmem:[#allocation5 + $0x68] sm:$0xff]  ;;  %v117_v58 = vld [vmem:[#allocation5 + $0x70] sm:$0xff]  ;;  %v228_v11 = vadd.s32 4294967264, %v475_v2  ;;  %v210_v13 = vsub.s32 %v207_v6, %v535_v5 }
  0x2c   : > { %155 = vadd.xlane.f32.xlu0 %v138_v21  ;;  %159 = vadd.xlane.f32.xlu1 %v140_v22  ;;  %v146_v46 = vsel %vm78_vm0, %v128_v40, 0.0  ;;  %v147_v53 = vsel %vm78_vm0, %v129_v47, 0.0  ;;  %v148_v54 = vsel %vm78_vm0, %v130_v48, 0.0  ;;  %v131_v55 = vmul.f32 %v115_v50, %v99_v49  ;;  %v102_v59 = vld [vmem:[%s484_s6 + $0x78] sm:$0xff] }
  0x2d   : > { %v132_v56 = vmul.f32 %v116_v52, %v100_v51  ;;  %v118_v60 = vld [vmem:[#allocation5 + $0x78] sm:$0xff]  ;;  %v133_v63 = vmul.f32 %v117_v58, %v101_v57  ;;  %v224_v14 = vsub.s32 %v221_v7, %v535_v5  ;;  %v217_v15 = vsub.s32 %v214_v8, %v535_v5 }
  0x2e   : > { %v149_v61 = vsel %vm78_vm0, %v131_v55, 0.0  ;;  %v134_v1 = vmul.f32 %v118_v60, %v102_v59  ;;  %v235_v16 = vadd.s32 4294967256, %v475_v2  ;;  %v231_v19 = vsub.s32 %v228_v11, %v535_v5 }
  0x2f   : > { %v150_v62 = vsel %vm78_vm0, %v132_v56, 0.0  ;;  %v151_v3 = vsel %vm78_vm0, %v133_v63, 0.0  ;;  %v242_v23 = vadd.s32 4294967248, %v475_v2  ;;  %v249_v26 = vadd.s32 4294967240, %v475_v2 }
  0x30   : > { %161 = vadd.xlane.f32.xlu0 %v141_v29  ;;  %163 = vadd.xlane.f32.xlu1 %v142_v30  ;;  %v152_v4 = vsel %vm78_vm0, %v134_v1, 0.0  ;;  %v238_v25 = vsub.s32 %v235_v16, %v535_v5  ;;  %v256_v34 = vadd.s32 4294967232, %v475_v2  ;;  %v270_v43 = vadd.s32 4294967216, %v475_v2 }
  0x31   : > { %v245_v33 = vsub.s32 %v242_v23, %v535_v5  ;;  %v252_v36 = vsub.s32 %v249_v26, %v535_v5  ;;  %v277_v47 = vadd.s32 4294967208, %v475_v2  ;;  %vm261_vm8 = vcmask 589312  }
  0x32   : > { %v259_v42 = vsub.s32 %v256_v34, %v535_v5  ;;  %v273_v52 = vsub.s32 %v270_v43, %v535_v5  ;;  %v291_v57 = vadd.s32 4294967192, %v475_v2  ;;  %vm268_vm9 = vcmask 654912  }
  0x33   : > { %v280_v56 = vsub.s32 %v277_v47, %v535_v5  ;;  %vm275_vm10 = vcmask 720512   ;;  %v298_v63 = vadd.s32 4294967184, %v475_v2  ;;  %v305_v1 = vadd.s32 4294967176, %v475_v2 }
  0x34   : > { %165 = vadd.xlane.f32.xlu0 %v143_v37  ;;  %167 = vadd.xlane.f32.xlu1 %v144_v38  ;;  %v263_v37 = vadd.s32 4294967224, %v475_v2  ;;  %v294_v6 = vsub.s32 %v291_v57, %v535_v5  ;;  %vm282_vm11 = vcmask 786112   ;;  %vm289_vm12 = vcmask 851712  }
  0x35   : > { %v301_v11 = vsub.s32 %v298_v63, %v535_v5  ;;  %vm296_vm13 = vcmask 917312   ;;  %vm303_vm14 = vcmask 982912   ;;  %vm310_vm15 = vcmask 1048512  }
  0x38   : > { %169 = vadd.xlane.f32.xlu0 %v145_v45  ;;  %171 = vadd.xlane.f32.xlu1 %v146_v46  ;;  %v266_v46 = vsub.s32 %v263_v37, %v535_v5 }
  0x3c   : > { %173 = vadd.xlane.f32.xlu0 %v147_v53  ;;  %175 = vadd.xlane.f32.xlu1 %v148_v54  ;;  %v284_v53 = vadd.s32 4294967200, %v475_v2 }
  0x40   : > { %177 = vadd.xlane.f32.xlu0 %v149_v61  ;;  %179 = vadd.xlane.f32.xlu1 %v150_v62  ;;  %v287_v62 = vsub.s32 %v284_v53, %v535_v5 }
  0x44   : > { %181 = vadd.xlane.f32.xlu0 %v151_v3  ;;  %183 = vadd.xlane.f32.xlu1 %v152_v4 }
  0xb1   : > { %v154_v9 = vpop.xlane.xlu0 %153  ;;  %v158_v10 = vpop.xlane.xlu1 %157 }
  0xb2   : > { %v206_v20 = vrot.slane %v154_v9, %v205_v12  ;;  %v218_v24 = vrot.slane %v158_v10, %v217_v15  ;;  %v308_v12 = vsub.s32 %v305_v1, %v535_v5 }
  0xb5   : > { %v156_v17 = vpop.xlane.xlu0 %155  ;;  %v160_v18 = vpop.xlane.xlu1 %159 }
  0xb6   : > { %v211_v21 = vrot.slane %v156_v17, %v210_v13  ;;  %v225_v22 = vrot.slane %v160_v18, %v224_v14 }
  0xb8   : > { %v213_v27 = vsel %vm212_vm1, %v211_v21, %v206_v20  ;;  %v186_v21 = vld [vmem:[%s185_s7] sm:$0x1] }
  0xb9   : > { %v220_v28 = vsel %vm219_vm2, %v218_v24, %v213_v27  ;;  %v162_v29 = vpop.xlane.xlu0 %161  ;;  %v164_v30 = vpop.xlane.xlu1 %163 }
  0xba   : > { %v227_v31 = vsel %vm226_vm3, %v225_v22, %v220_v28  ;;  %v232_v32 = vrot.slane %v162_v29, %v231_v19  ;;  %v239_v35 = vrot.slane %v164_v30, %v238_v25  ;;  %v357_v25 = vld [vmem:[%s581_s2] ss:$0 sm:$0xff] (%p81_p5) }
  0xbc   : > { %v234_v38 = vsel %vm233_vm4, %v232_v32, %v227_v31 }
  0xbd   : > { %v166_v39 = vpop.xlane.xlu0 %165  ;;  %v168_v40 = vpop.xlane.xlu1 %167  ;;  %v241_v44 = vsel %vm240_vm5, %v239_v35, %v234_v38 }
  0xbe   : > { %v246_v41 = vrot.slane %v166_v39, %v245_v33  ;;  %v253_v45 = vrot.slane %v168_v40, %v252_v36 }
  0xc0   : > { %v248_v48 = vsel %vm247_vm6, %v246_v41, %v241_v44 }
  0xc1   : > { %v170_v49 = vpop.xlane.xlu0 %169  ;;  %v172_v50 = vpop.xlane.xlu1 %171  ;;  %v255_v54 = vsel %vm254_vm7, %v253_v45, %v248_v48 }
  0xc2   : > { %v260_v51 = vrot.slane %v170_v49, %v259_v42  ;;  %v267_v55 = vrot.slane %v172_v50, %v266_v46 }
  0xc4   : > { %v262_v58 = vsel %vm261_vm8, %v260_v51, %v255_v54 }
  0xc5   : > { %v174_v59 = vpop.xlane.xlu0 %173  ;;  %v176_v60 = vpop.xlane.xlu1 %175  ;;  %v269_v3 = vsel %vm268_vm9, %v267_v55, %v262_v58 }
  0xc6   : > { %v274_v61 = vrot.slane %v174_v59, %v273_v52  ;;  %v281_v4 = vrot.slane %v176_v60, %v280_v56 }
  0xc8   : > { %v276_v7 = vsel %vm275_vm10, %v274_v61, %v269_v3 }
  0xc9   : > { %v178_v8 = vpop.xlane.xlu0 %177  ;;  %v180_v9 = vpop.xlane.xlu1 %179  ;;  %v283_v13 = vsel %vm282_vm11, %v281_v4, %v276_v7 }
  0xca   : > { %v288_v10 = vrot.slane %v178_v8, %v287_v62  ;;  %v295_v14 = vrot.slane %v180_v9, %v294_v6 }
  0xcc   : > { %v290_v15 = vsel %vm289_vm12, %v288_v10, %v283_v13 }
  0xcd   : > { %v182_v16 = vpop.xlane.xlu0 %181  ;;  %v184_v17 = vpop.xlane.xlu1 %183  ;;  %v297_v20 = vsel %vm296_vm13, %v295_v14, %v290_v15 }
  0xce   : > { %v302_v18 = vrot.slane %v182_v16, %v301_v11  ;;  %v309_v19 = vrot.slane %v184_v17, %v308_v12 }
  0xd0   : > { %v304_v22 = vsel %vm303_vm14, %v302_v18, %v297_v20  ;;  %83 = sbr.rel (!%p81_p5) target bundleno = 34 (0x22), region = 62 }
  0xd1   : > { %v311_v23 = vsel %vm310_vm15, %v309_v19, %v304_v22 }
  0xd2   : > { %v313_v24 = vadd.f32 %v311_v23, %v186_v21 }
  0xd4   : > { %314 = vst [vmem:[%s185_s7] sm:$0x1] %v313_v24 }
  0xdb   :  { %v318_v5 = vld [vmem:[#allocation7] sm:$0xff] }
  0xdc   :  { %v326_v26 = vadd.f32 %v357_v25, %v318_v5 }
  0xde   :  { %327 = vst [vmem:[#allocation7] sm:$0xff] %v326_v26 }
  0xdf   :  { %332 = vsyncadd [#allocation4], 96  ;;  %s445_s10 = smov [#allocation7]  }
  0xe0   :  { %s333_s11 = sshll.u32 %s445_s10, 4  ;;  %s334_s11 = int_to_ptr.vmem [resolvable:$true] %s333_s11 }
  0xe1   :  { %s400_s12 = scalar_lea.vmem %s334_s11, 32  ;;  %s404_s13 = scalar_lea.vmem %s334_s11, 128 }
  0xe2   :  { %p401_p6 = scmp.ne.s32.totalorder %s334_s11, %s400_s12  ;;  %p405_p7 = scmp.lt.s32.totalorder %s334_s11, %s334_s11 }
  0xe3   :  { %p406_p8 = scmp.lt.s32.totalorder %s404_s13, %s400_s12 }
  0xe5   :  { %p407_p9 = por %p406_p8, %p405_p7 }
  0xe7   :  { %p408_p10 = pnand %p407_p9, %p401_p6 }
  0xe9   :  { %411 = shalt.err (!%p408_p10)
}
  0xea   :  { %s446_s14 = smov 32   ;;  %s447_s15 = smov 2  }
  0xeb   :  { %339 = dma.vmem_to_hbm [thread:$0]  %s334_s11, 32, %s582_s3, [#allocation4], %s446_s14, %s446_s14, %s447_s15  }
  0xec   :  { %428 = dma.done.wait [#allocation4], 128  }
  0xed   :  { %429 = vsyncadd [#allocation4], 4294967168 }
  0xee   :  { %343 = vsyncpa [#allocation3], 1 }
  0xef   :  { %344 = vsyncpa [#allocation6], 1 }
  0xf0   :  { %345 = vsyncpa [#allocation4], 1 }

</bundles_post_ra>
